<compile_context>
chip_gen: v7x
topology: tpu7x:2x2x1
jax: 0.10.0
libtpu: 0.0.40
codegen_flags: <defaults>
</compile_context>

<pallas_src>
import functools
import math

import jax
import jax.numpy as jnp
from jax import lax
from jax.experimental import pallas as pl
from jax.experimental.pallas import tpu as pltpu


_INV_SQRT2 = 1.0 / math.sqrt(2.0)
_SQRT_2_OVER_PI = math.sqrt(2.0 / math.pi)


def _gelu(x, approximate):
    if approximate:
        # tanh approximation -> EUP slot (overlaps the MXU for free).
        return 0.5 * x * (1.0 + jnp.tanh(_SQRT_2_OVER_PI * (x + 0.044715 * x * x * x)))
    # Exact erf GELU: matches torch.nn.functional.gelu / ACT2FN['gelu'].
    return 0.5 * x * (1.0 + lax.erf(x * _INV_SQRT2))


def _kernel_acc(x_ref, w_ref, b_ref, o_ref, acc_ref, *, approximate):
    """grid = (m, n, k); k is the reduction axis. f32 scratch accumulator."""
    k = pl.program_id(2)

    @pl.when(k == 0)
    def _():
        # Fold the bias into the accumulator init (no zero-fill, no final add).
        acc_ref[...] = jnp.broadcast_to(b_ref[...].astype(jnp.float32),
                                        acc_ref.shape)

    acc_ref[...] += jnp.dot(x_ref[...], w_ref[...],
                            preferred_element_type=jnp.float32)

    @pl.when(k == pl.num_programs(2) - 1)
    def _():
        o_ref[...] = _gelu(acc_ref[...], approximate).astype(o_ref.dtype)


def _kernel_f32out(x_ref, w_ref, b_ref, o_ref, *, approximate):
    """f32 output: accumulate directly into the resident output tile."""
    k = pl.program_id(2)

    @pl.when(k == 0)
    def _():
        o_ref[...] = jnp.broadcast_to(b_ref[...].astype(jnp.float32),
                                      o_ref.shape)

    o_ref[...] += jnp.dot(x_ref[...], w_ref[...],
                          preferred_element_type=jnp.float32)

    @pl.when(k == pl.num_programs(2) - 1)
    def _():
        o_ref[...] = _gelu(o_ref[...], approximate)


def _round_up(x, m):
    return ((x + m - 1) // m) * m


def _vmem_capacity_bytes():
    """Physical per-TensorCore VMEM; conservative 64 MiB if the query fails."""
    try:
        info = pltpu.get_tpu_info()
        cap = getattr(info, "vmem_capacity_bytes", None)
        if cap:
            return int(cap)
    except Exception:
        pass
    return 64 << 20  # v7x-sized fallback: safe on every generation.


def _footprint(tm, tn, tk, in_sz, b_sz, out_sz, with_scratch):
    """Double-buffered tile VMEM footprint in bytes."""
    fp = (2 * tm * tk * in_sz       # x tile
          + 2 * tk * tn * in_sz     # W stripe
          + 2 * 8 * tn * b_sz       # bias (padded to 8 sublanes)
          + 2 * tm * tn * out_sz)   # output tile
    if with_scratch:
        fp += tm * tn * 4           # f32 accumulator
    return fp


def gph_intermediate(hidden_states, weight, bias, *,
                     tile_m=None, tile_n=None, tile_k=None,
                     compute_dtype=jnp.bfloat16, approximate=False):
    """Fused Linear(H -> I) + GELU.  Returns (..., I) in hidden_states.dtype."""
    orig_shape = hidden_states.shape
    H = int(orig_shape[-1])
    H_w, I = (int(d) for d in weight.shape)
    assert H == H_w, (H, H_w)
    M = 1
    for d in orig_shape[:-1]:
        M *= int(d)
    out_dtype = jnp.dtype(hidden_states.dtype)

    in_dtype = jnp.dtype(compute_dtype) if compute_dtype is not None else out_dtype
    in_sz = in_dtype.itemsize
    b_sz = jnp.dtype(bias.dtype).itemsize
    out_sz = out_dtype.itemsize
    # Sublane multiple for the row dim: 8 (4-byte), 16 (2-byte), 32 (1-byte).
    sub = {4: 8, 2: 16, 1: 32}.get(in_sz, 8)

    use_scratch = out_dtype != jnp.float32
    vmem_phys = _vmem_capacity_bytes()
    budget = int(0.55 * vmem_phys)   # tile budget; rest is compiler headroom

    # ---- tile selection (MXU / layout aligned) -----------------------------
    if tile_m is None:
        tile_m = min(512, _round_up(M, sub))
    tile_m = max(sub, _round_up(int(tile_m), sub))

    I_pad128 = _round_up(I, 128)
    if tile_n is None:
        if I_pad128 <= 1024:
            tile_n = I_pad128                      # single lane-dense N tile
        else:
            n_tiles = -(-I_pad128 // 1024)
            # multi-tile: 256-aligned for the 2x256^2 MXU on v6e/v7x
            tile_n = min(1024, _round_up(-(-I_pad128 // n_tiles), 256))
    else:
        tile_n = max(128, _round_up(int(tile_n), 128))

    if tile_k is None:
        # Prefer tile_k == H: x row-stripe stays resident across the N loop,
        # no K grid axis, no accumulator init/finalize, no x HBM re-read.
        if _footprint(tile_m, tile_n, H, in_sz, b_sz, out_sz, use_scratch) <= budget:
            tile_k = H
        else:
            tile_k = 512
            while (tile_k > 256 and
                   _footprint(tile_m, tile_n, tile_k, in_sz, b_sz, out_sz,
                              use_scratch) > budget):
                tile_k //= 2
    elif tile_k != H:
        tile_k = max(128, _round_up(int(tile_k), 128))

    M_pad = _round_up(M, tile_m)
    I_pad = _round_up(I, tile_n)
    H_pad = H if tile_k == H else _round_up(H, tile_k)

    # ---- padded / cast 2-D operands (no-ops when already aligned) ----------
    x2d = hidden_states.reshape(M, H)
    w2d = weight
    b2d = bias.reshape(1, I)
    if x2d.dtype != in_dtype:
        x2d = x2d.astype(in_dtype)
    if w2d.dtype != in_dtype:
        w2d = w2d.astype(in_dtype)
    if (M_pad, H_pad) != (M, H):
        x2d = jnp.pad(x2d, ((0, M_pad - M), (0, H_pad - H)))
    if (H_pad, I_pad) != (H, I):
        w2d = jnp.pad(w2d, ((0, H_pad - H), (0, I_pad - I)))
    if I_pad != I:
        b2d = jnp.pad(b2d, ((0, 0), (0, I_pad - I)))

    grid = (M_pad // tile_m, I_pad // tile_n, H_pad // tile_k)
    m_tiles, n_tiles, k_tiles = grid

    # ---- VMEM limit and cost estimate ---------------------------------------
    fp = _footprint(tile_m, tile_n, tile_k, in_sz, b_sz, out_sz, use_scratch)
    vmem_limit = int(min(max(fp * 5 // 4 + (2 << 20), 32 << 20),
                         int(0.85 * vmem_phys)))

    # With k_tiles == 1 the x block index is constant across j, so x is not
    # re-fetched per N tile; otherwise it is re-read once per N tile.
    x_bytes = M_pad * H_pad * in_sz * (n_tiles if k_tiles > 1 else 1)
    w_bytes = H_pad * I_pad * in_sz * m_tiles
    cost = pl.CostEstimate(
        flops=2 * M * H * I,
        transcendentals=M * I,
        bytes_accessed=int(x_bytes + w_bytes + I_pad * b_sz * m_tiles
                           + M_pad * I_pad * out_sz))

    if use_scratch:
        kernel = functools.partial(_kernel_acc, approximate=approximate)
        scratch = [pltpu.VMEM((tile_m, tile_n), jnp.float32)]
    else:
        kernel = functools.partial(_kernel_f32out, approximate=approximate)
        scratch = []

    out2d = pl.pallas_call(
        kernel,
        out_shape=jax.ShapeDtypeStruct((M_pad, I_pad), out_dtype),
        grid_spec=pltpu.PrefetchScalarGridSpec(
            num_scalar_prefetch=0,
            grid=grid,
            in_specs=[
                pl.BlockSpec((tile_m, tile_k), lambda i, j, k: (i, k)),  # x rows
                pl.BlockSpec((tile_k, tile_n), lambda i, j, k: (k, j)),  # W stripe
                pl.BlockSpec((1, tile_n), lambda i, j, k: (0, j)),       # bias
            ],
            out_specs=pl.BlockSpec((tile_m, tile_n), lambda i, j, k: (i, j)),
            scratch_shapes=scratch,
        ),
        compiler_params=pltpu.CompilerParams(
            dimension_semantics=("parallel", "parallel", "arbitrary"),
            vmem_limit_bytes=vmem_limit,
        ),
        cost_estimate=cost,
    )(x2d, w2d, b2d)

    out2d = out2d[:M, :I]
    return out2d.reshape(*orig_shape[:-1], I)


if __name__ == "__main__":
    key = jax.random.PRNGKey(0)

    def make_inputs(k, B, S, H, I):
        kx, kw, kb = jax.random.split(k, 3)
        x = jax.random.normal(kx, (B, S, H), dtype=jnp.float32)
        w = jax.random.normal(kw, (H, I), dtype=jnp.float32) * (1.0 / math.sqrt(H))
        b = jax.random.normal(kb, (I,), dtype=jnp.float32) * 0.02
        return x, w, b

    def reference(x, w, b):
        y = jnp.einsum("bsh,hi->bsi", x, w,
                       precision=lax.Precision.HIGHEST) + b
        return jax.nn.gelu(y, approximate=False)

    k1, k2, k3 = jax.random.split(key, 3)

    # 1) Default path (bf16 MXU inputs, f32 accumulation, tile_k == H).
    #    Small config consistent with the module: hidden=32, intermediate=128.
    x, w, b = make_inputs(k1, 2, 8, 32, 128)
    out = jax.block_until_ready(gph_intermediate(x, w, b))
    ref = reference(x.astype(jnp.bfloat16).astype(jnp.float32),
                    w.astype(jnp.bfloat16).astype(jnp.float32), b)
    assert out.shape == (2, 8, 128)
    assert jnp.allclose(out, ref, atol=2e-2, rtol=2e-2), \
        float(jnp.max(jnp.abs(out - ref)))

    # 2) Exact f32 parity path with user tiles: non-divisible M and I plus a
    #    tiled K axis (padding + direct-f32-output accumulation).
    x, w, b = make_inputs(k2, 3, 37, 256, 200)
    out = jax.block_until_ready(
        gph_intermediate(x, w, b, tile_m=64, tile_n=128, tile_k=128,
                         compute_dtype=jnp.float32))
    ref = reference(x, w, b)
    assert out.shape == (3, 37, 200)
    assert jnp.allclose(out, ref, atol=2e-3, rtol=2e-3), \
        float(jnp.max(jnp.abs(out - ref)))

    # 3) Default bf16 path on non-divisible shapes with auto-selected tiles.
    x, w, b = make_inputs(k3, 3, 37, 256, 200)
    out = jax.block_until_ready(gph_intermediate(x, w, b))
    ref_bf16 = reference(x.astype(jnp.bfloat16).astype(jnp.float32),
                         w.astype(jnp.bfloat16).astype(jnp.float32), b)
    assert out.shape == (3, 37, 200)
    assert jnp.allclose(out, ref_bf16, atol=2e-2, rtol=2e-2), \
        float(jnp.max(jnp.abs(out - ref_bf16)))

    print("KERNEL_OK")
</pallas_src>

<mosaic_0001>
module attributes {stable_mosaic.version = 11 : i64} {
  func.func @_kernel_f32out(%arg0: i32, %arg1: i32, %arg2: i32, %arg3: memref<16x32xbf16, #tpu.memory_space<vmem>>, %arg4: memref<32x128xbf16, #tpu.memory_space<vmem>>, %arg5: memref<1x128xf32, #tpu.memory_space<vmem>>, %arg6: memref<16x128xf32, #tpu.memory_space<vmem>>) attributes {dimension_semantics = [#tpu.dimension_semantics<parallel>, #tpu.dimension_semantics<parallel>, #tpu.dimension_semantics<arbitrary>], iteration_bounds = array<i64: 1, 1, 1>, scalar_prefetch = 0 : i64, scratch_operands = 0 : i64, tpu.core_type = #tpu.core_type<tc>, window_params = [{transform_indices = @transform_0, window_bounds = array<i64: 16, 32>}, {transform_indices = @transform_1, window_bounds = array<i64: 32, 128>}, {transform_indices = @transform_2, window_bounds = array<i64: 1, 128>}, {transform_indices = @transform_3, window_bounds = array<i64: 16, 128>}]} {
    %c0_i32 = arith.constant 0 : i32
    %0 = arith.cmpi eq, %arg2, %c0_i32 : i32
    %1 = arith.extui %0 : i1 to i32
    %c0_i32_0 = arith.constant 0 : i32
    %2 = arith.cmpi ne, %1, %c0_i32_0 : i32
    scf.if %2 {
      %c0_10 = arith.constant 0 : index
      %c0_11 = arith.constant 0 : index
      %12 = vector.load %arg5[%c0_10, %c0_11] : memref<1x128xf32, #tpu.memory_space<vmem>>, vector<1x128xf32>
      %13 = vector.shape_cast %12 : vector<1x128xf32> to vector<1x128xf32>
      %14 = vector.broadcast %13 : vector<1x128xf32> to vector<16x128xf32>
      %c0_12 = arith.constant 0 : index
      %c0_13 = arith.constant 0 : index
      %15 = vector.load %arg6[%c0_12, %c0_13] : memref<16x128xf32, #tpu.memory_space<vmem>>, vector<16x128xf32>
      tpu.vector_store %arg6[%c0_12, %c0_13], %14 {strides = array<i32>} : memref<16x128xf32, #tpu.memory_space<vmem>>, vector<16x128xf32>,
    } else {
    }
    %c0 = arith.constant 0 : index
    %c0_1 = arith.constant 0 : index
    %3 = vector.load %arg6[%c0, %c0_1] : memref<16x128xf32, #tpu.memory_space<vmem>>, vector<16x128xf32>
    %c0_2 = arith.constant 0 : index
    %c0_3 = arith.constant 0 : index
    %4 = vector.load %arg3[%c0_2, %c0_3] : memref<16x32xbf16, #tpu.memory_space<vmem>>, vector<16x32xbf16>
    %c0_4 = arith.constant 0 : index
    %c0_5 = arith.constant 0 : index
    %5 = vector.load %arg4[%c0_4, %c0_5] : memref<32x128xbf16, #tpu.memory_space<vmem>>, vector<32x128xbf16>
    %cst = arith.constant dense<0.000000e+00> : vector<16x128xf32>
    %6 = tpu.matmul %4, %5, %cst {dimension_numbers = #tpu.dot_dimension_numbers<[1], [0], [0], [1], [0, 0, 1, 1], [], []>} : vector<16x32xbf16>, vector<32x128xbf16>, vector<16x128xf32> -> vector<16x128xf32>
    %7 = arith.addf %3, %6 : vector<16x128xf32>
    %c0_6 = arith.constant 0 : index
    %c0_7 = arith.constant 0 : index
    %8 = vector.load %arg6[%c0_6, %c0_7] : memref<16x128xf32, #tpu.memory_space<vmem>>, vector<16x128xf32>
    tpu.vector_store %arg6[%c0_6, %c0_7], %7 {strides = array<i32>} : memref<16x128xf32, #tpu.memory_space<vmem>>, vector<16x128xf32>,
    %c0_i32_8 = arith.constant 0 : i32
    %9 = arith.cmpi eq, %arg2, %c0_i32_8 : i32
    %10 = arith.extui %9 : i1 to i32
    %c0_i32_9 = arith.constant 0 : i32
    %11 = arith.cmpi ne, %10, %c0_i32_9 : i32
    scf.if %11 {
      %c0_10 = arith.constant 0 : index
      %c0_11 = arith.constant 0 : index
      %12 = vector.load %arg6[%c0_10, %c0_11] : memref<16x128xf32, #tpu.memory_space<vmem>>, vector<16x128xf32>
      %cst_12 = arith.constant 5.000000e-01 : f32
      %13 = vector.broadcast %cst_12 : f32 to vector<16x128xf32>
      %14 = arith.mulf %13, %12 : vector<16x128xf32>
      %cst_13 = arith.constant 0.707106769 : f32
      %15 = vector.broadcast %cst_13 : f32 to vector<16x128xf32>
      %16 = arith.mulf %12, %15 : vector<16x128xf32>
      %17 = math.erf %16 : vector<16x128xf32>
      %cst_14 = arith.constant 1.000000e+00 : f32
      %18 = vector.broadcast %cst_14 : f32 to vector<16x128xf32>
      %19 = arith.addf %18, %17 : vector<16x128xf32>
      %20 = arith.mulf %14, %19 : vector<16x128xf32>
      %c0_15 = arith.constant 0 : index
      %c0_16 = arith.constant 0 : index
      %21 = vector.load %arg6[%c0_15, %c0_16] : memref<16x128xf32, #tpu.memory_space<vmem>>, vector<16x128xf32>
      tpu.vector_store %arg6[%c0_15, %c0_16], %20 {strides = array<i32>} : memref<16x128xf32, #tpu.memory_space<vmem>>, vector<16x128xf32>,
    } else {
    }
    return
  }
  func.func @transform_0(%arg0: i32, %arg1: i32, %arg2: i32) -> (i32, i32) {
    %c0_i32 = arith.constant 0 : i32
    return %arg0, %arg2 : i32, i32
  }
  func.func @transform_1(%arg0: i32, %arg1: i32, %arg2: i32) -> (i32, i32) {
    %c0_i32 = arith.constant 0 : i32
    return %arg2, %arg1 : i32, i32
  }
  func.func @transform_2(%arg0: i32, %arg1: i32, %arg2: i32) -> (i32, i32) {
    %c0_i32 = arith.constant 0 : i32
    %c0_i32_0 = arith.constant 0 : i32
    return %c0_i32, %arg1 : i32, i32
  }
  func.func @transform_3(%arg0: i32, %arg1: i32, %arg2: i32) -> (i32, i32) {
    %c0_i32 = arith.constant 0 : i32
    return %arg0, %arg1 : i32, i32
  }
}

</mosaic_0001>

<bundles_post_ra>
// kernel: tpu_custom_call.1
= control target key start
LH: loop header
LB: loop body
LE: loop exit
PB: predicated region body
PF: predicated region fallthrough
CT: control target
= control target key end

     0   :  { %8 = vsyncpa [#allocation3], 0  ;;  %s338_s0 = inlined_call_operand.hbm [shape: bf16[16,32], index: 0, kind: input, shape index: {}]   ;;  %s339_s1 = inlined_call_operand.hbm [shape: bf16[32,128], index: 1, kind: input, shape index: {}]   ;;  %s340_s2 = inlined_call_operand.vmem [shape: f32[1,128], index: 2, kind: input, shape index: {}]   ;;  %s341_s3 = inlined_call_operand.hbm [shape: f32[16,128], index: 3, kind: output, shape index: {}]  }
   0x1   :  { %9 = vsyncpa [#allocation6], 0 }
   0x2   :  { %10 = vsyncpa [#allocation4], 0  ;;  %s270_s12 = smov [#allocation2]   ;;  %s198_s16 = scalar_lea.hbm %s338_s0, 128 }
   0x3   :  { %s16_s13 = sshll.u32 %s270_s12, 4  ;;  %p199_p0 = scmp.ne.s32.totalorder %s338_s0, %s198_s16  ;;  %s17_s13 = int_to_ptr.vmem [resolvable:$true] %s16_s13 }
   0x4   :  { %p202_p1 = scmp.lt.u32.totalorder %s198_s16, %s338_s0 }
   0x6   :  { %p204_p2 = pnand %p202_p1, %p199_p0 }
   0x8   :  { %207 = shalt.err (!%p204_p2)
}
   0x9   :  { %s208_s21 = scalar_lea.vmem %s17_s13, 128  ;;  %p213_p4 = scmp.lt.s32.totalorder %s17_s13, %s17_s13 }
   0xa   :  { %p209_p3 = scmp.ne.s32.totalorder %s17_s13, %s208_s21  ;;  %p214_p5 = scmp.lt.s32.totalorder %s208_s21, %s208_s21 }
   0xc   :  { %p215_p6 = por %p214_p5, %p213_p4 }
   0xe   :  { %p216_p7 = pnand %p215_p6, %p209_p3 }
  0x10   :  { %219 = shalt.err (!%p216_p7)
}
  0x11   :  { %s271_s22 = smov 64   ;;  %s272_s23 = smov 4  }
  0x12   :  { %22 = dma.hbm_to_vmem [thread:$0]  %s338_s0, 128, %s17_s13, [#allocation3], %s271_s22, %s271_s22, %s272_s23  }
  0x13   :  { %s273_s26 = smov [#allocation5]   ;;  %s220_s30 = scalar_lea.hbm %s339_s1, 256 }
  0x14   :  { %s28_s27 = sshll.u32 %s273_s26, 4  ;;  %p221_p8 = scmp.ne.s32.totalorder %s339_s1, %s220_s30  ;;  %s29_s27 = int_to_ptr.vmem [resolvable:$true] %s28_s27 }
  0x15   :  { %p224_p9 = scmp.lt.u32.totalorder %s220_s30, %s339_s1 }
  0x17   :  { %p226_p10 = pnand %p224_p9, %p221_p8 }
  0x19   :  { %229 = shalt.err (!%p226_p10)
}
  0x1a   :  { %s230_s8 = scalar_lea.vmem %s29_s27, 256  ;;  %p235_p12 = scmp.lt.s32.totalorder %s29_s27, %s29_s27 }
  0x1b   :  { %p231_p11 = scmp.ne.s32.totalorder %s29_s27, %s230_s8  ;;  %p236_p13 = scmp.lt.s32.totalorder %s230_s8, %s230_s8 }
  0x1d   :  { %p237_p0 = por %p236_p13, %p235_p12 }
  0x1f   :  { %p238_p1 = pnand %p237_p0, %p231_p11 }
  0x21   :  { %241 = shalt.err (!%p238_p1)
}
  0x22   :  { %34 = dma.hbm_to_vmem [thread:$0]  %s339_s1, 256, %s29_s27, [#allocation6], %s271_s22, %s271_s22, %s272_s23  }
  0x23   :  { %264 = dma.done.wait [#allocation3], 128  }
  0x24   :  { %265 = vsyncadd [#allocation3], 4294967168 }
  0x25   :  { %266 = dma.done.wait [#allocation6], 256  }
  0x26   :  { %267 = vsyncadd [#allocation6], 4294967040  ;;  %v274_v0 = vmov 0.0   ;;  %vm275_vm0 = vmmov 0   ;;  %v191_v1 = vld [vmem:[#allocation5] sm:$0xff]   ;;  %v192_v2 = vld [vmem:[#allocation5 + $0x8] sm:$0xff]  }
  0x27   :  { %174 = vmatprep.subr.bf16.mxu0 %v274_v0  ;;  %178 = vmatprep.mubr.msk.bf16.mxu0 %vm275_vm0, %v274_v0  ;;  %v193_v3 = vld [vmem:[#allocation2] sm:$0xff]   ;;  %vm82_vm1 = vcmask 261120   ;;  %s276_s1 = smov [#allocation7]  }
  0x28   :  { %175 = vmatpush3.bf16.msra.mxu0 %v191_v1  ;;  %v166_v4 = vld [vmem:[%s340_s2] ss:$0 sm:$0xff]  ;;  %s153_s12 = sshll.u32 %s276_s1, 4  ;;  %s154_s12 = int_to_ptr.vmem [resolvable:$true] %s153_s12 }
  0x29   :  { %176 = vmatprep.subr.bf16.mxu0 %v274_v0  ;;  %s242_s2 = scalar_lea.vmem %s154_s12, 256  ;;  %p247_p3 = scmp.lt.s32.totalorder %s154_s12, %s154_s12 }
  0x2a   :  { %p243_p2 = scmp.ne.s32.totalorder %s154_s12, %s242_s2  ;;  %p248_p4 = scmp.lt.s32.totalorder %s242_s2, %s242_s2 }
  0x2c   :  { %177 = vmatpush3.bf16.msra.mxu0 %v192_v2  ;;  %p249_p5 = por %p248_p4, %p247_p3 }
  0x2e   :  { %p250_p6 = pnand %p249_p5, %p243_p2 }
  0x2f   :  { %179 = vmatmul.mubr.msk.bf16.vlgmr.msra.gmra.mrb[0].mxu0 %vm82_vm1, %v193_v3 }
 0x102   :  { %v120_v5 = vpop.f32.mrb[0].mxu0 }
 0x103   :  { %v127_v6 = vadd.f32 %v166_v4, %v120_v5  ;;  %v180_v7 = vpop.f32.mrb[1].mxu0 }
 0x104   :  { %v123_v8 = vpop.f32.mrb[2].mxu0 }
 0x105   :  { %v128_v9 = vadd.f32 %v166_v4, %v123_v8  ;;  %v181_v10 = vpop.f32.mrb[3].mxu0  ;;  %v138_v11 = vmul.f32 0.70710677, %v127_v6  ;;  %v136_v14 = vmul.f32 0.5, %v127_v6 }
 0x107   :  { %v139_v12 = vmul.f32 0.70710677, %v128_v9  ;;  %194 = verf.f32 %v138_v11  ;;  %v137_v17 = vmul.f32 0.5, %v128_v9 }
 0x109   :  { %196 = verf.f32 %v139_v12 }
 0x111   :  { %v195_v13 = vpop.eup %194 }
 0x112   :  { %v142_v15 = vadd.f32 1.0, %v195_v13 }
 0x113   :  { %v197_v16 = vpop.eup %196 }
 0x114   :  { %v143_v18 = vadd.f32 1.0, %v197_v16  ;;  %v144_v19 = vmul.f32 %v142_v15, %v136_v14 }
 0x116   :  { %v145_v20 = vmul.f32 %v143_v18, %v137_v17  ;;  %146 = vst [vmem:[#allocation7] sm:$0xff] %v144_v19 }
 0x118   :  { %147 = vst [vmem:[#allocation7 + $0x8] sm:$0xff] %v145_v20 }
 0x119   :  { %253 = shalt.err (!%p250_p6)
}
 0x11a   :  { %s254_s15 = scalar_lea.hbm %s341_s3, 256 }
 0x11b   :  { %p255_p7 = scmp.ne.s32.totalorder %s341_s3, %s254_s15  ;;  %p258_p8 = scmp.lt.u32.totalorder %s254_s15, %s341_s3 }
 0x11d   :  { %p260_p9 = pnand %p258_p8, %p255_p7 }
 0x11f   :  { %263 = shalt.err (!%p260_p9)
}
 0x120   :  { %s277_s20 = smov 128   ;;  %s278_s21 = smov 8  }
 0x121   :  { %159 = dma.vmem_to_hbm [thread:$0]  %s154_s12, 256, %s341_s3, [#allocation4], %s277_s20, %s277_s20, %s278_s21  }
 0x122   :  { %268 = dma.done.wait [#allocation4], 256  }
 0x123   :  { %269 = vsyncadd [#allocation4], 4294967040 }
 0x124   :  { %163 = vsyncpa [#allocation3], 1 }
 0x125   :  { %164 = vsyncpa [#allocation6], 1 }
 0x126   :  { %165 = vsyncpa [#allocation4], 1 }

</bundles_post_ra>
